<compile_context>
chip_gen: v7x
topology: tpu7x:2x2x1
jax: 0.10.0
libtpu: 0.0.40
codegen_flags: <defaults>
</compile_context>

<pallas_src>
import functools

import jax
import jax.numpy as jnp
from jax.experimental import pallas as pl
from jax.experimental.pallas import tpu as pltpu


def _round_up(x, m):
    return ((x + m - 1) // m) * m


def _dce_kernel(total_rows, batch_tile, has_tail, labels_sum_to_one,
                logits_ref, labels_ref, out_ref):
    """One batch tile per grid step; writes this tile's partial loss sum."""
    x = logits_ref[...]                                    # (tb, C), input dtype
    y = labels_ref[...]                                    # (tb, C), input dtype

    # numerically-stable log_softmax pieces against the row max
    m = jnp.max(x, axis=-1, keepdims=True)                 # (tb, 1), input dtype
    xm = x.astype(jnp.float32) - m.astype(jnp.float32)     # (tb, C) f32, shared temp
    lse = jnp.log(jnp.sum(jnp.exp(xm), axis=-1, keepdims=True))   # (tb, 1) f32

    # -sum_j y_j * logprob_j = lse * sum_y - sum_j y_j * (x_j - m)
    dot_y_xm = jnp.sum(y * xm, axis=-1, keepdims=True)     # promotes to f32
    if labels_sum_to_one:
        per_row = lse - dot_y_xm                           # (tb, 1)
    else:
        sum_y = jnp.sum(y, axis=-1, keepdims=True, dtype=jnp.float32)
        per_row = lse * sum_y - dot_y_xm                   # (tb, 1)

    if has_tail:
        # rows past the true batch are garbage reads; discard with a select
        # (must stay a select — masked rows may hold NaN/Inf).
        i = pl.program_id(0)
        row_ids = i * batch_tile + jax.lax.broadcasted_iota(
            jnp.int32, per_row.shape, 0)
        per_row = jnp.where(row_ids < total_rows, per_row, 0.0)

    # per-tile partial sum, replicated into this tile's private output block
    out_ref[...] = jnp.full(out_ref.shape, jnp.sum(per_row), dtype=jnp.float32)


def _in_spec(block_shape, index_map, deep):
    if deep:
        try:
            return pl.BlockSpec(block_shape, index_map,
                                pipeline_mode=pl.Buffered(3))
        except TypeError:
            pass
    return pl.BlockSpec(block_shape, index_map)


def dense_cross_entropy(logits, labels, *, batch_tile=None,
                        labels_sum_to_one=False, vmem_limit_bytes=None):
    """Pallas implementation of DenseCrossEntropy.forward. Returns scalar f32.

    Fast path: feed logits/labels as bf16 (kernel accumulates in f32) and set
    labels_sum_to_one=True when the label rows are (soft) one-hot.
    """
    B, C = logits.shape
    assert labels.shape == (B, C)

    in_itemsize = max(jnp.dtype(logits.dtype).itemsize,
                      jnp.dtype(labels.dtype).itemsize)
    min_itemsize = min(jnp.dtype(logits.dtype).itemsize,
                       jnp.dtype(labels.dtype).itemsize)
    # native sublane packing: 8 rows for 4-byte dtypes, 16 for 2-byte, 32 for 1-byte
    sublane = max(8, 32 // max(1, min_itemsize))

    # VMEM capacity -> tile-sizing budget (~0.35x) and scoped limit (~0.75x).
    # (128 MiB on v5e/v6e -> ~45/96 MiB; 64 MiB per TC on v7x -> ~22/48 MiB.)
    try:
        vmem_cap = int(pltpu.get_tpu_info().vmem_capacity_bytes)
    except Exception:
        vmem_cap = 64 * 1024 * 1024          # conservative (v7x per-TensorCore)
    budget = int(0.35 * vmem_cap)
    if vmem_limit_bytes is None:
        vmem_limit_bytes = int(0.75 * vmem_cap)

    # 2 inputs x 2 pipeline buffers in the input dtype + ~4 tile-sized f32 temps
    bytes_per_row = (2 * 2 * in_itemsize + 4 * 4) * C

    if batch_tile is None:
        batch_tile = max(sublane, budget // max(1, bytes_per_row))

    # round to packing granularity, clamp to padded B, and cap so the grid has
    # >= 2 steps whenever possible (keeps both v7x TensorCores busy).
    b_pad = _round_up(B, sublane)
    two_way = _round_up(-(-B // 2), sublane)
    batch_tile = max(sublane, (int(batch_tile) // sublane) * sublane)
    batch_tile = max(sublane, min(batch_tile, b_pad, two_way))

    # very-wide-C guard: even a single-sublane tile may exceed the scoped limit
    min_footprint = bytes_per_row * sublane
    if min_footprint > vmem_limit_bytes:
        # TODO(synk): class-axis tiling with online max/LSE for vocab-scale C.
        vmem_limit_bytes = min(int(0.9 * vmem_cap),
                               max(vmem_limit_bytes, min_footprint))

    num_tiles = int(pl.cdiv(B, batch_tile))
    has_tail = (B % batch_tile) != 0

    # deeper prefetch only when per-step DMAs are tiny (small C) and there are
    # enough steps for it to matter; otherwise keep default double-buffering.
    per_input_tile_bytes = batch_tile * C * in_itemsize
    deep = (per_input_tile_bytes < (1 << 20)) and (num_tiles >= 4)

    kernel = functools.partial(_dce_kernel, B, batch_tile, has_tail,
                               labels_sum_to_one)

    partials = pl.pallas_call(
        kernel,
        out_shape=jax.ShapeDtypeStruct((num_tiles, 8, 128), jnp.float32),
        grid_spec=pltpu.PrefetchScalarGridSpec(
            num_scalar_prefetch=0,
            grid=(num_tiles,),
            in_specs=[
                _in_spec((batch_tile, C), lambda i: (i, 0), deep),
                _in_spec((batch_tile, C), lambda i: (i, 0), deep),
            ],
            out_specs=pl.BlockSpec((1, 8, 128), lambda i: (i, 0, 0)),
        ),
        compiler_params=pltpu.CompilerParams(
            dimension_semantics=("parallel",),
            vmem_limit_bytes=vmem_limit_bytes,
        ),
    )(logits, labels)

    # each tile's partial is replicated across its (8, 128) block; read one copy
    return jnp.sum(partials[:, 0, 0]) / jnp.float32(B)


if __name__ == "__main__":
    key = jax.random.PRNGKey(0)
    k1, k2 = jax.random.split(key)

    B, C = 16, 32  # small shapes: batch=16, num_classes=32
    logits = jax.random.normal(k1, (B, C), dtype=jnp.float32)
    # soft labels (rows sum to 1), as dense CE expects
    labels = jax.nn.softmax(jax.random.normal(k2, (B, C), dtype=jnp.float32),
                            axis=-1)

    loss = jax.block_until_ready(dense_cross_entropy(logits, labels))

    # reference (plain JAX) check of exact forward semantics
    ref_logprobs = jax.nn.log_softmax(logits, axis=-1)
    ref_loss = jnp.mean(jnp.sum(-labels * ref_logprobs, axis=-1))
    assert jnp.allclose(loss, ref_loss, atol=1e-5, rtol=1e-5), (loss, ref_loss)

    # bf16 fast path (halves HBM traffic; f32 accumulation in-kernel)
    logits_bf = logits.astype(jnp.bfloat16)
    labels_bf = labels.astype(jnp.bfloat16)
    loss_bf = jax.block_until_ready(
        dense_cross_entropy(logits_bf, labels_bf, labels_sum_to_one=True))
    ref_bf = jnp.mean(jnp.sum(
        -labels_bf.astype(jnp.float32)
        * jax.nn.log_softmax(logits_bf.astype(jnp.float32), axis=-1), axis=-1))
    assert jnp.allclose(loss_bf, ref_bf, atol=2e-2, rtol=2e-2), (loss_bf, ref_bf)

    print("KERNEL_OK")
</pallas_src>

<mosaic_0001>
module attributes {stable_mosaic.version = 11 : i64} {
  func.func @_dce_kernel(%arg0: i32, %arg1: memref<8x32xf32, #tpu.memory_space<vmem>>, %arg2: memref<8x32xf32, #tpu.memory_space<vmem>>, %arg3: memref<1x8x128xf32, #tpu.memory_space<vmem>>) attributes {dimension_semantics = [#tpu.dimension_semantics<parallel>], iteration_bounds = array<i64: 2>, scalar_prefetch = 0 : i64, scratch_operands = 0 : i64, tpu.core_type = #tpu.core_type<tc>, window_params = [{transform_indices = @transform_0, window_bounds = array<i64: 8, 32>}, {transform_indices = @transform_1, window_bounds = array<i64: 8, 32>}, {transform_indices = @transform_2, window_bounds = array<i64: 1, 8, 128>}]} {
    %c0 = arith.constant 0 : index
    %c0_0 = arith.constant 0 : index
    %0 = vector.load %arg1[%c0, %c0_0] : memref<8x32xf32, #tpu.memory_space<vmem>>, vector<8x32xf32>
    %c0_1 = arith.constant 0 : index
    %c0_2 = arith.constant 0 : index
    %1 = vector.load %arg2[%c0_1, %c0_2] : memref<8x32xf32, #tpu.memory_space<vmem>>, vector<8x32xf32>
    %cst = arith.constant dense<0xFF800000> : vector<8xf32>
    %2 = vector.multi_reduction <maximumf>, %0, %cst [1] : vector<8x32xf32> to vector<8xf32>
    %3 = vector.shape_cast %2 : vector<8xf32> to vector<8x1xf32>
    %4 = vector.broadcast %3 : vector<8x1xf32> to vector<8x32xf32>
    %5 = arith.subf %0, %4 : vector<8x32xf32>
    %6 = math.exp %5 : vector<8x32xf32>
    %cst_3 = arith.constant dense<0.000000e+00> : vector<8xf32>
    %7 = vector.multi_reduction <add>, %6, %cst_3 [1] : vector<8x32xf32> to vector<8xf32>
    %8 = vector.shape_cast %7 : vector<8xf32> to vector<8x1xf32>
    %9 = math.log %8 : vector<8x1xf32>
    %10 = arith.mulf %1, %5 : vector<8x32xf32>
    %cst_4 = arith.constant dense<0.000000e+00> : vector<8xf32>
    %11 = vector.multi_reduction <add>, %10, %cst_4 [1] : vector<8x32xf32> to vector<8xf32>
    %12 = vector.shape_cast %11 : vector<8xf32> to vector<8x1xf32>
    %cst_5 = arith.constant dense<0.000000e+00> : vector<8xf32>
    %13 = vector.multi_reduction <add>, %1, %cst_5 [1] : vector<8x32xf32> to vector<8xf32>
    %14 = vector.shape_cast %13 : vector<8xf32> to vector<8x1xf32>
    %15 = arith.mulf %9, %14 : vector<8x1xf32>
    %16 = arith.subf %15, %12 : vector<8x1xf32>
    %17 = vector.shape_cast %16 : vector<8x1xf32> to vector<1x8x1xf32>
    %cst_6 = arith.constant dense<0.000000e+00> : vector<1xf32>
    %18 = vector.multi_reduction <add>, %17, %cst_6 [1, 2] : vector<1x8x1xf32> to vector<1xf32>
    %19 = vector.shape_cast %18 : vector<1xf32> to vector<1x1x1xf32>
    %20 = vector.extract %19[0, 0, 0] : f32 from vector<1x1x1xf32>
    %21 = vector.broadcast %20 : f32 to vector<1x8x128xf32>
    %c0_7 = arith.constant 0 : index
    %c0_8 = arith.constant 0 : index
    %c0_9 = arith.constant 0 : index
    %22 = vector.load %arg3[%c0_7, %c0_8, %c0_9] : memref<1x8x128xf32, #tpu.memory_space<vmem>>, vector<1x8x128xf32>
    tpu.vector_store %arg3[%c0_7, %c0_8, %c0_9], %21 {strides = array<i32>} : memref<1x8x128xf32, #tpu.memory_space<vmem>>, vector<1x8x128xf32>,
    return
  }
  func.func @transform_0(%arg0: i32) -> (i32, i32) {
    %c0_i32 = arith.constant 0 : i32
    %c0_i32_0 = arith.constant 0 : i32
    return %arg0, %c0_i32 : i32, i32
  }
  func.func @transform_1(%arg0: i32) -> (i32, i32) {
    %c0_i32 = arith.constant 0 : i32
    %c0_i32_0 = arith.constant 0 : i32
    return %arg0, %c0_i32 : i32, i32
  }
  func.func @transform_2(%arg0: i32) -> (i32, i32, i32) {
    %c0_i32 = arith.constant 0 : i32
    %c0_i32_0 = arith.constant 0 : i32
    %c0_i32_1 = arith.constant 0 : i32
    return %arg0, %c0_i32, %c0_i32_0 : i32, i32, i32
  }
}

</mosaic_0001>

<bundles_post_ra>
// kernel: tpu_custom_call.1
= control target key start
LH: loop header
LB: loop body
LE: loop exit
PB: predicated region body
PF: predicated region fallthrough
CT: control target
= control target key end

     0   :  { %7 = vsyncpa [#allocation3], 0  ;;  %s775_s0 = inlined_call_operand.hbm [shape: f32[16,32], index: 0, kind: input, shape index: {}]   ;;  %s776_s1 = inlined_call_operand.hbm [shape: f32[16,32], index: 1, kind: input, shape index: {}]   ;;  %s777_s2 = inlined_call_operand.hbm [shape: f32[2,8,128], index: 2, kind: output, shape index: {}]  }
   0x1   :  { %9 = vsyncpa [#allocation3 + $0x1], 0 }
   0x2   :  { %10 = vsyncpa [#allocation6], 0 }
   0x3   :  { %12 = vsyncpa [#allocation6 + $0x1], 0 }
   0x4   :  { %13 = vsyncpa [#allocation4], 0 }
   0x5   :  { %15 = vsyncpa [#allocation4 + $0x1], 0  ;;  %s561_s9 = smov 0   ;;  %s563_s10 = smov 0  }
   0x6   :  { %s565_s11 = smov 0   ;;  %s567_s12 = smov 0  }
   0x7 LB: > { %s582_s13 = sadd.s32 4294967295, %s541_s12   ;;  %s339_s14 = sadd.s32 4294967294, %s541_s12   ;;  %s541_s12 = sphi %s567_s12, %s796_s12   ;;  %s537_s11 = sphi %s565_s11, %s795_s11   ;;  %s533_s10 = sphi %s563_s10, %s794_s10   ;;  %s529_s9 = sphi %s561_s9, %s793_s9  }
   0x8   : > { %s586_s15 = sadd.s32 1, %s541_s12   ;;  %s28_s16 = sadd.s32 1, %s537_s11 }
   0x9   : > { %s25_s17 = ssub.s32 %s541_s12, %s586_s15  ;;  %p35_p0 = scmp.ne.s32.totalorder %s537_s11, %s533_s10 }
   0xa   : > { %p26_p1 = scmp.eq.s32.totalorder %s25_s17, 0  ;;  %p36_p2 = scmp.eq.s32.totalorder %s541_s12, 0 }
   0xb   : > { %p41_p3 = scmp.ne.s32.totalorder %s533_s10, %s529_s9  ;;  %p42_p4 = scmp.eq.s32.totalorder %s582_s13, 0 }
   0xc   : > { %s598_s18 = scalar_select %p26_p1, %s537_s11, %s28_s16  }
   0xd   : > { %p600_p5 = por %p36_p2, %p35_p0  ;;  %p604_p6 = por %p42_p4, %p41_p3 }
   0xe   : > { %p91_p7 = scmp.eq.s32.totalorder %s582_s13, 1  ;;  %p97_p8 = scmp.eq.s32.totalorder %s339_s14, 1 }
   0xf   : > { %s781_s20 = scalar_select %p604_p6, 1, 0 }
  0x10   : > { %p373_p10 = scmp.lt.s32.totalorder %s541_s12, 2  ;;  %p611_p11 = por %p91_p7, %p35_p0 }
  0x11   : > { %p615_p12 = por %p97_p8, %p41_p3  ;;  %s620_s23 = sand.u32 1, %s537_s11  }
  0x12   : > { %s782_s21 = scalar_select %p611_p11, 1, 0 }
  0x13   : > { %s783_s22 = scalar_select %p615_p12, 1, 0 }
  0x14   : > { %s343_s24 = sshll.u32 %s541_s12, 7  ;;  %s342_s25 = sshll.u32 %s620_s23, 3 }
  0x15   : > { %s629_s28 = scalar_lea.hbm %s775_s0, %s343_s24  ;;  %s121_s29 = scalar_lea.vmem [#allocation2], %s342_s25 }
  0x16   : > { %s128_s30 = sshll.u32 %s121_s29, 4  ;;  %p635_p13 = pnand %p373_p10, %p600_p5  ;;  %s639_s30 = int_to_ptr.vmem [resolvable:$true] %s128_s30 }
  0x17   : > { %s118_s4 = scalar_lea.sflag [#allocation3], %s620_s23  ;;  %s411_s5 = scalar_lea.hbm %s629_s28, 128 }
  0x18   : > { %p412_p2 = scmp.ne.s32.totalorder %s629_s28, %s411_s5  ;;  %p413_p3 = pneg %p635_p13 }
  0x19   : > { %s416_s8 = scalar_lea.hbm %s775_s0, 256  ;;  %p417_p5 = scmp.lt.u32.totalorder %s629_s28, %s775_s0 }
  0x1a   : > { %p414_p4 = pnand %p413_p3, %p412_p2  ;;  %p418_p8 = scmp.lt.u32.totalorder %s416_s8, %s411_s5 }
  0x1b   : > { %p420_p9 = scmp.lt.u32.totalorder %s411_s5, %s629_s28 }
  0x1c   : > { %p415_p7 = pneg %p414_p4  ;;  %p419_p10 = por %p418_p8, %p417_p5 }
  0x1e   : > { %p421_p0 = por %p420_p9, %p419_p10 }
  0x20   : > { %p422_p1 = pnand %p421_p0, %p415_p7 }
  0x22   : > { %425 = shalt.err (!%p422_p1)
}
  0x23   : > { %s426_s17 = scalar_lea.vmem %s639_s30, 128  ;;  %s543_s19 = smov [#allocation2]  }
  0x24   : > { %p427_p2 = scmp.ne.s32.totalorder %s639_s30, %s426_s17  ;;  %s431_s26 = sshll.u32 %s543_s19, 4  ;;  %s432_s26 = int_to_ptr.vmem [resolvable:$false] %s431_s26 }
  0x25   : > { %s433_s27 = scalar_lea.vmem %s432_s26, 256  ;;  %p434_p11 = scmp.lt.s32.totalorder %s639_s30, %s432_s26 }
  0x26   : > { %p429_p4 = pnand %p427_p2, %p413_p3  ;;  %p435_p5 = scmp.lt.s32.totalorder %s433_s27, %s426_s17 }
  0x28   : > { %p430_p12 = pneg %p429_p4  ;;  %p436_p8 = por %p435_p5, %p434_p11 }
  0x2a   : > { %p437_p9 = pnand %p436_p8, %p430_p12 }
  0x2c   : > { %440 = shalt.err (!%p437_p9)
}
  0x2d   : > { %365 = dma.hbm_to_vmem [thread:$0]  (!%p635_p13), %s629_s28, 128, %s639_s30, %s118_s4  }
  0x2e   : > { %p785_p0 = scmp.lt.s32.totalorder %s541_s12, 3  ;;  %p786_p1 = scmp.ge.s32.totalorder %s541_s12, 1 }
  0x2f   : > { %s682_s7 = scalar_lea.hbm %s776_s1, %s343_s24  ;;  %s139_s8 = scalar_lea.vmem [#allocation5], %s342_s25 }
  0x30   : > { %p673_p7 = pnand %p786_p1, %p785_p0  ;;  %s146_s14 = sshll.u32 %s139_s8, 4  ;;  %s147_s14 = int_to_ptr.vmem [resolvable:$true] %s146_s14 }
  0x31   : > { %s136_s28 = scalar_lea.sflag [#allocation6], %s620_s23  ;;  %s441_s30 = scalar_lea.hbm %s682_s7, 128 }
  0x32   : > { %s787_s29 = scalar_select %p673_p7, 1, 0 }
  0x33   : > { %p442_p11 = scmp.ne.s32.totalorder %s682_s7, %s441_s30  ;;  %s446_s24 = scalar_lea.hbm %s776_s1, 256 }
  0x34   : > { %p447_p2 = scmp.lt.u32.totalorder %s682_s7, %s776_s1  ;;  %p448_p4 = scmp.lt.u32.totalorder %s446_s24, %s441_s30 }
  0x35   : > { %p444_p12 = pnand %p442_p11, %p413_p3  ;;  %p450_p8 = scmp.lt.u32.totalorder %s441_s30, %s682_s7 }
  0x36   : > { %p449_p5 = por %p448_p4, %p447_p2 }
  0x37   : > { %p445_p10 = pneg %p444_p12 }
  0x38   : > { %p451_p9 = por %p450_p8, %p449_p5 }
  0x3a   : > { %p452_p0 = pnand %p451_p9, %p445_p10 }
  0x3c   : > { %455 = shalt.err (!%p452_p0)
}
  0x3d   : > { %s456_s23 = scalar_lea.vmem %s147_s14, 128  ;;  %s544_s25 = smov [#allocation5]  }
  0x3e   : > { %p457_p1 = scmp.ne.s32.totalorder %s147_s14, %s456_s23  ;;  %s461_s26 = sshll.u32 %s544_s25, 4  ;;  %s462_s26 = int_to_ptr.vmem [resolvable:$false] %s461_s26 }
  0x3f   : > { %s463_s27 = scalar_lea.vmem %s462_s26, 256  ;;  %p464_p6 = scmp.lt.s32.totalorder %s147_s14, %s462_s26 }
  0x40   : > { %p459_p11 = pnand %p457_p1, %p413_p3  ;;  %p465_p7 = scmp.lt.s32.totalorder %s463_s27, %s456_s23 }
  0x42   : > { %p460_p12 = pneg %p459_p11  ;;  %p466_p2 = por %p465_p7, %p464_p6 }
  0x44   : > { %p467_p4 = pnand %p466_p2, %p460_p12 }
  0x46   : > { %470 = shalt.err (!%p467_p4)
}
  0x47   : > { %368 = dma.hbm_to_vmem [thread:$0]  (!%p635_p13), %s682_s7, 128, %s147_s14, %s136_s28  }
  0x48   : > { %p788_p10 = scmp.ne.s32.totalorder %s787_s29, 0 }
  0x49   : > { %s709_s5 = sand.u32 (!%p788_p10), 1, %s533_s10   ;;  %p789_p6 = scmp.ne.s32.totalorder (!%p788_p10), %s781_s20, 0 }
  0x4a   : > { %155 = sbr.rel (%p788_p10) target bundleno = 623 (0x26f), region = 28  ;;  %s712_s6 = sshll.u32 (!%p788_p10), %s709_s5, 3 }
  0x4b   : > { %s158_s8 = scalar_lea.sflag (!%p788_p10), [#allocation3], %s709_s5  ;;  %s161_s30 = scalar_lea.vmem (!%p788_p10), [#allocation2], %s712_s6 }
  0x51   : > { %516 = dma.done.wait (%p789_p6), %s158_s8, 128  }
  0x52   : > { %518 = vsyncadd (%p789_p6), %s158_s8, 4294967168  ;;  %s167_s3 = scalar_lea.sflag [#allocation6], %s709_s5  ;;  %s170_s29 = scalar_lea.vmem [#allocation5], %s712_s6 }
  0x53   : > { %520 = dma.done.wait (%p789_p6), %s167_s3, 128  }
  0x54   : > { %522 = vsyncadd (%p789_p6), %s167_s3, 4294967168  ;;  %vm198_vm0 = vcmask 261120   ;;  %v196_v0 = vld [vmem:[%s161_s30] sm:$0xff]  ;;  %v197_v2 = vld [vmem:[%s170_s29] sm:$0xff]  ;;  %vm219_vm1 = vcmask 7168   ;;  %s195_s20 = scalar_lea.vmem [#allocation7], %s712_s6 }
  0x55   : > { %v199_v1 = vsel %vm198_vm0, %v196_v0, -inf  ;;  %v214_v3 = vsel %vm198_vm0, %v197_v2, 0.0  ;;  %s246_s7 = sshll.u32 %s195_s20, 4  ;;  %s351_s14 = sshll.u32 %s582_s13, 7  ;;  %s728_s7 = int_to_ptr.vmem [resolvable:$true] %s246_s7 }
  0x56   : > { %200 = vmax.xlane.f32.xlu0 %v199_v1  ;;  %215 = vadd.xlane.f32.xlu1 %v214_v3  ;;  %s733_s24 = scalar_lea.hbm %s777_s2, %s351_s14  ;;  %s233_s17 = scalar_lea.sflag [#allocation4], %s709_s5 }
  0x57   : > { %s471_s19 = scalar_lea.vmem %s728_s7, 128  ;;  %p790_p3 = scmp.ne.s32.totalorder %s782_s21, 0 }
  0x58   : > { %p472_p13 = scmp.ne.s32.totalorder %s728_s7, %s471_s19  ;;  %s545_s13 = smov [#allocation7]  }
  0x59   : > { %s475_s23 = sshll.u32 %s545_s13, 4  ;;  %s476_s23 = int_to_ptr.vmem [resolvable:$false] %s475_s23 }
  0x5a   : > { %p473_p7 = pnand %p472_p13, %p790_p3  ;;  %s477_s25 = scalar_lea.vmem %s476_s23, 256 }
  0x5b   : > { %p478_p8 = scmp.lt.s32.totalorder %s728_s7, %s476_s23  ;;  %p479_p9 = scmp.lt.s32.totalorder %s477_s25, %s471_s19 }
  0x5c   : > { %p474_p5 = pneg %p473_p7 }
  0x5d   : > { %p480_p0 = por %p479_p9, %p478_p8 }
  0x5f   : > { %p481_p1 = pnand %p480_p0, %p474_p5 }
  0xe3   : > { %v201_v4 = vpop.xlane.xlu0 %200  ;;  %v216_v12 = vpop.xlane.xlu1 %215 }
  0xe4   : > { %v202_v5 = vsub.f32 %v196_v0, %v201_v4 }
  0xe6   : > { %v203_v6 = vmul.f32 1.442695, %v202_v5  ;;  %v210_v7 = vmul.f32 %v202_v5, %v197_v2 }
  0xe8   : > { %407 = vpow2.f32 %v203_v6  ;;  %v211_v8 = vsel %vm198_vm0, %v210_v7, 0.0 }
  0xe9   : > { %212 = vadd.xlane.f32.xlu1 %v211_v8 }
  0xf2   : > { %v408_v9 = vpop.eup %407 }
  0xf3   : > { %v205_v10 = vsel %vm198_vm0, %v408_v9, 0.0 }
  0xf4   : > { %206 = vadd.xlane.f32.xlu0 %v205_v10 }
 0x176   : > { %v213_v16 = vpop.xlane.xlu1 %212 }
 0x181   : > { %v207_v11 = vpop.xlane.xlu0 %206 }
 0x182   : > { %409 = vlog2.f32 %v207_v11 }
 0x18c   : > { %v410_v13 = vpop.eup %409 }
 0x18d   : > { %v209_v14 = vmul.f32 0.6931472, %v410_v13 }
 0x18f   : > { %v217_v15 = vmul.f32 %v216_v12, %v209_v14 }
 0x191   : > { %v218_v17 = vsub.f32 %v217_v15, %v213_v16 }
 0x193   : > { %v220_v18 = vsel %vm219_vm1, %v218_v17, 0.0 }
 0x194   : > { %221 = vadd.xlane.f32.xlu0 %v220_v18 }
 0x221   : > { %v222_v19 = vpop.xlane.xlu0 %221 }
 0x222   : > { %v223_v20 = vrot.slane %v222_v19, 4 }
 0x224   : > { %v224_v21 = vadd.f32 %v223_v20, %v222_v19 }
 0x226   : > { %v225_v22 = vrot.slane %v224_v21, 2 }
 0x228   : > { %v226_v23 = vadd.f32 %v225_v22, %v224_v21 }
 0x22a   : > { %v227_v24 = vrot.slane %v226_v23, 1 }
 0x22c   : > { %v228_v25 = vadd.f32 %v227_v24, %v226_v23 }
 0x22e   : > { %354 = vpush %v228_v25 }
 0x25f   : > { %s355_s28 = spop %354 }
 0x260   : > { %v230_v26 = vstv %s355_s28 }
 0x261   : > { %231 = vst [vmem:[%s195_s20] sm:$0xff] %v230_v26 }
 0x262   : > { %484 = shalt.err (!%p481_p1)
}
 0x263   : > { %s485_s26 = scalar_lea.hbm %s733_s24, 128  ;;  %s489_s6 = scalar_lea.hbm %s777_s2, 256 }
 0x264   : > { %p486_p11 = scmp.ne.s32.totalorder %s733_s24, %s485_s26  ;;  %p490_p4 = scmp.lt.u32.totalorder %s733_s24, %s777_s2 }
 0x265   : > { %p491_p10 = scmp.lt.u32.totalorder %s489_s6, %s485_s26  ;;  %p493_p13 = scmp.lt.u32.totalorder %s485_s26, %s733_s24 }
 0x266   : > { %p487_p12 = pnand %p486_p11, %p790_p3 }
 0x267   : > { %p492_p6 = por %p491_p10, %p490_p4 }
 0x268   : > { %p488_p2 = pneg %p487_p12 }
 0x269   : > { %p494_p7 = por %p493_p13, %p492_p6 }
 0x26b   : > { %p495_p5 = pnand %p494_p7, %p488_p2 }
 0x26d   : > { %498 = shalt.err (!%p495_p5)
}
 0x26e   : > { %360 = dma.vmem_to_hbm [thread:$0]  (%p790_p3), %s728_s7, 128, %s733_s24, %s233_s17  }
 0x26f PF: > { %s258_s3 = sand.u32 1, %s529_s9   ;;  %p791_p8 = scmp.ne.s32.totalorder %s783_s22, 0 }
 0x270   : > { %p792_p9 = scmp.ge.s32.totalorder %s541_s12, 2  ;;  %s259_s29 = scalar_lea.sflag [#allocation4], %s258_s3 }
 0x272   : > { %p370_p0 = pnand %p792_p9, %p791_p8 }
 0x274   : > { %524 = dma.done.wait (!%p370_p0), %s259_s29, 128  }
 0x275   : > { %526 = vsyncadd (!%p370_p0), %s259_s29, 4294967168  ;;  %p18_p1 = scmp.ge.s32.totalorder %s586_s15, 4   ;;  %s793_s9 = smov %s533_s10 }
 0x276   : > { %s794_s10 = smov %s537_s11  ;;  %s795_s11 = smov %s598_s18 }
 0x277   : > { %s796_s12 = smov %s586_s15  ;;  %20 = sbr.rel (!%p18_p1) target bundleno = 7 (0x7), region = 86 }
 0x27e   :  { %264 = vsyncpa [#allocation3], 1 }
 0x27f   :  { %266 = vsyncpa [#allocation3 + $0x1], 1 }
 0x280   :  { %267 = vsyncpa [#allocation6], 1 }
 0x281   :  { %269 = vsyncpa [#allocation6 + $0x1], 1 }
 0x282   :  { %270 = vsyncpa [#allocation4], 1 }
 0x283   :  { %272 = vsyncpa [#allocation4 + $0x1], 1 }

</bundles_post_ra>
